<compile_context>
chip_gen: v5e
topology: v5e:2x2
jax: 0.10.0
libtpu: 0.0.40
codegen_flags: <defaults>
</compile_context>

<pallas_src>
import functools

import jax
import jax.numpy as jnp
from jax import lax
from jax.experimental import pallas as pl
from jax.experimental.pallas import tpu as pltpu


_LANE = 128


def _round_up(n, m):
    return -(-n // m) * m


def _vmem_budget():
    """Return (vmem_limit_bytes, per-step data budget) for the current chip."""
    cap = 64 * 1024 * 1024  # conservative default (v7x per-core physical VMEM)
    try:
        info = pltpu.get_tpu_info()
        c = getattr(info, "vmem_capacity_bytes", None)
        if c:
            cap = int(c)
    except Exception:
        pass
    # ~96 MiB limit on 128 MiB parts (v5e/v6e), ~48 MiB on v7x.
    limit = min((cap * 3) // 4, 100 * 1024 * 1024)
    return limit, limit // 2


def _pick_hw_tile(hw, max_lanes):
    """Balanced lane tile: multiple of 128 (or the full hw), <= max_lanes."""
    max_lanes = max(_LANE, (max_lanes // _LANE) * _LANE)
    if hw <= max_lanes:
        return hw                       # single full-width tile, no edge block
    n = -(-hw // max_lanes)             # number of tiles
    return min(max_lanes, _round_up(-(-hw // n), _LANE))


def _sigmoid1(z):
    # sigmoid(z) == 0.5*tanh(0.5*z)+0.5: one EUP push instead of exp+recip.
    return 0.5 * jnp.tanh(0.5 * z) + 0.5


# ---------------------------------------------------------------------------
# Fused single-read kernel: TB batch items per grid step, full (C, HW) slab.
# ---------------------------------------------------------------------------
def _se_fused_kernel(x_ref, w1_ref, w2_ref, o_ref, *, inv_hw, compute_dtype):
    # x_ref/o_ref: (TB, C, HW); w1: (C, Ch); w2: (Ch, C).
    x = x_ref[...]
    # Global average pool: f32 accumulation, one multiply by precomputed 1/HW.
    y = jnp.sum(x, axis=2, dtype=jnp.float32) * inv_hw                  # (TB, C)
    h = jnp.maximum(
        jnp.dot(y, w1_ref[...], preferred_element_type=jnp.float32), 0.0)
    g = _sigmoid1(
        jnp.dot(h, w2_ref[...], preferred_element_type=jnp.float32))    # (TB, C)
    xc = x.astype(compute_dtype)
    gc = g.astype(compute_dtype)[:, :, None]
    o_ref[...] = _sigmoid1(xc * gc).astype(o_ref.dtype)


# ---------------------------------------------------------------------------
# Two-pass fallback.  Pass 1: pooled sum (HW tiled, masked ragged tail) + gate.
# ---------------------------------------------------------------------------
def _se_gate_kernel(x_ref, w1_ref, w2_ref, g_ref, acc_ref, *, inv_hw, rem_last):
    # x_ref: (1, C, hw_tile); g_ref: (1, C, 1) f32; acc_ref: (1, C) f32.
    k = pl.program_id(1)
    n_hw = pl.num_programs(1)
    hw_tile = x_ref.shape[2]

    @pl.when(k == 0)
    def _():
        acc_ref[...] = jnp.zeros_like(acc_ref)

    if rem_last == hw_tile:
        # HW divides evenly into tiles (or single full-width tile): no masking.
        acc_ref[...] += jnp.sum(x_ref[...], axis=2, dtype=jnp.float32)
    else:
        @pl.when(k < n_hw - 1)
        def _():
            acc_ref[...] += jnp.sum(x_ref[...], axis=2, dtype=jnp.float32)

        @pl.when(k == n_hw - 1)
        def _():
            # Edge block: lanes >= rem_last are out of bounds (garbage) - mask.
            xe = x_ref[...]
            lane = lax.broadcasted_iota(jnp.int32, xe.shape, 2)
            xe = jnp.where(lane < rem_last, xe, jnp.zeros_like(xe))
            acc_ref[...] += jnp.sum(xe, axis=2, dtype=jnp.float32)

    @pl.when(k == n_hw - 1)
    def _():
        y = acc_ref[...] * inv_hw                                        # (1, C)
        h = jnp.maximum(
            jnp.dot(y, w1_ref[...], preferred_element_type=jnp.float32), 0.0)
        g = _sigmoid1(
            jnp.dot(h, w2_ref[...], preferred_element_type=jnp.float32))
        g_ref[...] = g[:, :, None]


# Pass 2: pure elementwise scale + output sigmoid, tiled over batch and HW.
def _se_scale_kernel(g_ref, x_ref, o_ref, *, compute_dtype):
    # g_ref: (1, C, 1) f32; x_ref/o_ref: (1, C, hw_tile).  Edge-block OOB lanes
    # are garbage on read but their stores are masked by Pallas.
    g = g_ref[...].astype(compute_dtype)
    x = x_ref[...].astype(compute_dtype)
    o_ref[...] = _sigmoid1(x * g).astype(o_ref.dtype)


# ---------------------------------------------------------------------------
# Wrapper
# ---------------------------------------------------------------------------
def se_layer(x, w1, w2, *, force_two_pass=False, max_hw_tile=None):
    """SELayer forward. x: (B, C, H, W); w1: (C, C//r); w2: (C//r, C)."""
    B, C, H, W = x.shape
    HW = H * W
    Ch = w1.shape[1]
    itemsize = jnp.dtype(x.dtype).itemsize
    inv_hw = float(1.0 / HW)

    w1 = w1.astype(jnp.float32)
    w2 = w2.astype(jnp.float32)

    # Elementwise scale/sigmoid in bf16 when the I/O dtype is bf16, else f32.
    compute_dtype = jnp.bfloat16 if x.dtype == jnp.bfloat16 else jnp.float32
    cbytes = jnp.dtype(compute_dtype).itemsize

    vmem_limit, data_budget = _vmem_budget()

    x_flat = x.reshape(B, C, HW)  # contiguous reshape: free, no HBM copy

    # ---- fused single-read path --------------------------------------------
    # per-lane bytes: double-buffered in + out blocks + ~2 compute-dtype temps.
    per_hw_fused = C * (4 * itemsize + 2 * cbytes)
    slab_bytes = per_hw_fused * HW
    use_fused = (not force_two_pass) and slab_bytes <= data_budget

    if use_fused:
        # Pack batch items per grid step; restrict TB to a divisor of B so no
        # ragged batch blocks are generated.
        tb = max(1, min(B, data_budget // max(1, slab_bytes)))
        while B % tb != 0:
            tb -= 1
        grid_b = B // tb

        out_flat = pl.pallas_call(
            functools.partial(_se_fused_kernel, inv_hw=inv_hw,
                              compute_dtype=compute_dtype),
            out_shape=jax.ShapeDtypeStruct((B, C, HW), x.dtype),
            grid_spec=pltpu.PrefetchScalarGridSpec(
                num_scalar_prefetch=0,
                grid=(grid_b,),
                in_specs=[
                    pl.BlockSpec((tb, C, HW), lambda b: (b, 0, 0)),
                    pl.BlockSpec((C, Ch), lambda b: (0, 0)),
                    pl.BlockSpec((Ch, C), lambda b: (0, 0)),
                ],
                out_specs=pl.BlockSpec((tb, C, HW), lambda b: (b, 0, 0)),
            ),
            compiler_params=pltpu.CompilerParams(
                dimension_semantics=("parallel",),
                vmem_limit_bytes=vmem_limit,
            ),
        )(x_flat, w1, w2)
        return out_flat.reshape(B, C, H, W)

    # ---- two-pass fallback ---------------------------------------------------
    # Pass 1: pooled sum + FC gate.  Only the input block is resident, so the
    # tile can be much larger than pass 2's.
    per_hw_gate = C * (2 * itemsize + 4)
    gate_lanes = data_budget // max(1, per_hw_gate)
    if max_hw_tile is not None:
        gate_lanes = min(gate_lanes, max_hw_tile)
    gate_tile = _pick_hw_tile(HW, gate_lanes)
    n_hw_g = pl.cdiv(HW, gate_tile)
    rem_last = HW - (n_hw_g - 1) * gate_tile

    gate = pl.pallas_call(
        functools.partial(_se_gate_kernel, inv_hw=inv_hw, rem_last=rem_last),
        out_shape=jax.ShapeDtypeStruct((B, C, 1), jnp.float32),
        grid_spec=pltpu.PrefetchScalarGridSpec(
            num_scalar_prefetch=0,
            grid=(B, n_hw_g),
            in_specs=[
                pl.BlockSpec((1, C, gate_tile), lambda b, k: (b, 0, k)),
                pl.BlockSpec((C, Ch), lambda b, k: (0, 0)),
                pl.BlockSpec((Ch, C), lambda b, k: (0, 0)),
            ],
            out_specs=pl.BlockSpec((1, C, 1), lambda b, k: (b, 0, 0)),
            scratch_shapes=[pltpu.VMEM((1, C), jnp.float32)],
        ),
        compiler_params=pltpu.CompilerParams(
            dimension_semantics=("parallel", "arbitrary"),
            vmem_limit_bytes=vmem_limit,
        ),
    )(x_flat, w1, w2)

    # Pass 2: elementwise scale + sigmoid, both grid axes parallel.
    per_hw_scale = C * (4 * itemsize + 2 * cbytes)
    scale_lanes = data_budget // max(1, per_hw_scale)
    if max_hw_tile is not None:
        scale_lanes = min(scale_lanes, max_hw_tile)
    scale_tile = _pick_hw_tile(HW, scale_lanes)
    n_hw_s = pl.cdiv(HW, scale_tile)

    out_flat = pl.pallas_call(
        functools.partial(_se_scale_kernel, compute_dtype=compute_dtype),
        out_shape=jax.ShapeDtypeStruct((B, C, HW), x.dtype),
        grid_spec=pltpu.PrefetchScalarGridSpec(
            num_scalar_prefetch=0,
            grid=(B, n_hw_s),
            in_specs=[
                pl.BlockSpec((1, C, 1), lambda b, j: (b, 0, 0)),
                pl.BlockSpec((1, C, scale_tile), lambda b, j: (b, 0, j)),
            ],
            out_specs=pl.BlockSpec((1, C, scale_tile), lambda b, j: (b, 0, j)),
        ),
        compiler_params=pltpu.CompilerParams(
            dimension_semantics=("parallel", "parallel"),
            vmem_limit_bytes=vmem_limit,
        ),
    )(gate, x_flat)

    return out_flat.reshape(B, C, H, W)


def se_layer_ref(x, w1, w2):
    """Plain-JAX reference matching the PyTorch forward."""
    xf = x.astype(jnp.float32)
    y = jnp.mean(xf, axis=(2, 3))                                       # (B, C)
    h = jnp.maximum(y @ w1.astype(jnp.float32), 0.0)
    g = jax.nn.sigmoid(h @ w2.astype(jnp.float32))                      # (B, C)
    return jax.nn.sigmoid(xf * g[:, :, None, None]).astype(x.dtype)


if __name__ == "__main__":
    key = jax.random.PRNGKey(0)
    kx, k1, k2, kx2, kx3 = jax.random.split(key, 5)

    # channel=6, reduction=3 -> hidden=2 (channel // reduction).
    B, C, H, W = 2, 6, 16, 16
    Ch = 2

    x = jax.random.normal(kx, (B, C, H, W), dtype=jnp.float32)
    # PyTorch nn.Linear stores weight as (out, in) and computes y @ W.T;
    # pre-transpose so the kernel does y @ w.
    fc1_w = jax.random.normal(k1, (Ch, C), dtype=jnp.float32) * 0.5
    fc2_w = jax.random.normal(k2, (C, Ch), dtype=jnp.float32) * 0.5
    w1 = fc1_w.T  # (C, Ch)
    w2 = fc2_w.T  # (Ch, C)

    ref = se_layer_ref(x, w1, w2)

    # Fused single-read path with batch packing (TB=2, single grid step).
    out_fused = se_layer(x, w1, w2)
    jax.block_until_ready(out_fused)
    assert jnp.allclose(out_fused, ref, atol=1e-5, rtol=1e-5), "fused mismatch"

    # Two-pass (pool+gate then scale) path on the same inputs.
    out_two = se_layer(x, w1, w2, force_two_pass=True)
    jax.block_until_ready(out_two)
    assert jnp.allclose(out_two, ref, atol=1e-5, rtol=1e-5), "two-pass mismatch"

    # B == 1 with a non-128-multiple spatial size: fused path (B>=2 gate
    # removed), unpadded full-width block, masked edge output stores.
    x2 = jax.random.normal(kx2, (1, C, 13, 13), dtype=jnp.float32)
    ref2 = se_layer_ref(x2, w1, w2)
    out_b1 = se_layer(x2, w1, w2)
    jax.block_until_ready(out_b1)
    assert jnp.allclose(out_b1, ref2, atol=1e-5, rtol=1e-5), "b1 fused mismatch"

    # Two-pass with a forced small tile: exercises ragged-lane masking in the
    # pooled-sum kernel and masked edge-block stores in the scale kernel.
    out_edge = se_layer(x2, w1, w2, force_two_pass=True, max_hw_tile=128)
    jax.block_until_ready(out_edge)
    assert jnp.allclose(out_edge, ref2, atol=1e-5, rtol=1e-5), "edge mismatch"

    # Odd batch (B=3): fused path, TB restricted to a divisor of B.
    x3 = jax.random.normal(kx3, (3, C, 10, 10), dtype=jnp.float32)
    ref3 = se_layer_ref(x3, w1, w2)
    out_b3 = se_layer(x3, w1, w2)
    jax.block_until_ready(out_b3)
    assert jnp.allclose(out_b3, ref3, atol=1e-5, rtol=1e-5), "b3 mismatch"

    print("KERNEL_OK")
</pallas_src>

<mosaic_0001>
module attributes {stable_mosaic.version = 11 : i64} {
  func.func @_se_fused_kernel(%arg0: i32, %arg1: memref<2x6x256xf32, #tpu.memory_space<vmem>>, %arg2: memref<6x2xf32, #tpu.memory_space<vmem>>, %arg3: memref<2x6xf32, #tpu.memory_space<vmem>>, %arg4: memref<2x6x256xf32, #tpu.memory_space<vmem>>) attributes {dimension_semantics = [#tpu.dimension_semantics<parallel>], iteration_bounds = array<i64: 1>, scalar_prefetch = 0 : i64, scratch_operands = 0 : i64, tpu.core_type = #tpu.core_type<tc>, window_params = [{transform_indices = @transform_0, window_bounds = array<i64: 2, 6, 256>}, {pipeline_mode = #tpu.pipeline_mode<synchronous>, transform_indices = @transform_1, window_bounds = array<i64: 6, 2>}, {pipeline_mode = #tpu.pipeline_mode<synchronous>, transform_indices = @transform_2, window_bounds = array<i64: 2, 6>}, {transform_indices = @transform_3, window_bounds = array<i64: 2, 6, 256>}]} {
    %c0 = arith.constant 0 : index
    %c0_0 = arith.constant 0 : index
    %c0_1 = arith.constant 0 : index
    %0 = vector.load %arg1[%c0, %c0_0, %c0_1] : memref<2x6x256xf32, #tpu.memory_space<vmem>>, vector<2x6x256xf32>
    %cst = arith.constant dense<0.000000e+00> : vector<2x6xf32>
    %1 = vector.multi_reduction <add>, %0, %cst [2] : vector<2x6x256xf32> to vector<2x6xf32>
    %cst_2 = arith.constant 3.906250e-03 : f32
    %2 = vector.broadcast %cst_2 : f32 to vector<2x6xf32>
    %3 = arith.mulf %1, %2 : vector<2x6xf32>
    %c0_3 = arith.constant 0 : index
    %c0_4 = arith.constant 0 : index
    %4 = vector.load %arg2[%c0_3, %c0_4] : memref<6x2xf32, #tpu.memory_space<vmem>>, vector<6x2xf32>
    %cst_5 = arith.constant dense<0.000000e+00> : vector<2x2xf32>
    %5 = tpu.matmul %3, %4, %cst_5 {dimension_numbers = #tpu.dot_dimension_numbers<[1], [0], [0], [1], [0, 0, 1, 1], [], []>} : vector<2x6xf32>, vector<6x2xf32>, vector<2x2xf32> -> vector<2x2xf32>
    %cst_6 = arith.constant 0.000000e+00 : f32
    %6 = vector.broadcast %cst_6 : f32 to vector<2x2xf32>
    %7 = arith.maximumf %5, %6 : vector<2x2xf32>
    %c0_7 = arith.constant 0 : index
    %c0_8 = arith.constant 0 : index
    %8 = vector.load %arg3[%c0_7, %c0_8] : memref<2x6xf32, #tpu.memory_space<vmem>>, vector<2x6xf32>
    %cst_9 = arith.constant dense<0.000000e+00> : vector<2x6xf32>
    %9 = tpu.matmul %7, %8, %cst_9 {dimension_numbers = #tpu.dot_dimension_numbers<[1], [0], [0], [1], [0, 0, 1, 1], [], []>} : vector<2x2xf32>, vector<2x6xf32>, vector<2x6xf32> -> vector<2x6xf32>
    %cst_10 = arith.constant 5.000000e-01 : f32
    %10 = vector.broadcast %cst_10 : f32 to vector<2x6xf32>
    %11 = arith.mulf %10, %9 : vector<2x6xf32>
    %12 = math.tanh %11 : vector<2x6xf32>
    %cst_11 = arith.constant 5.000000e-01 : f32
    %13 = vector.broadcast %cst_11 : f32 to vector<2x6xf32>
    %14 = arith.mulf %13, %12 : vector<2x6xf32>
    %cst_12 = arith.constant 5.000000e-01 : f32
    %15 = vector.broadcast %cst_12 : f32 to vector<2x6xf32>
    %16 = arith.addf %14, %15 : vector<2x6xf32>
    %17 = vector.shape_cast %16 : vector<2x6xf32> to vector<2x6x1xf32>
    %18 = vector.broadcast %17 : vector<2x6x1xf32> to vector<2x6x256xf32>
    %19 = arith.mulf %0, %18 : vector<2x6x256xf32>
    %cst_13 = arith.constant 5.000000e-01 : f32
    %20 = vector.broadcast %cst_13 : f32 to vector<2x6x256xf32>
    %21 = arith.mulf %20, %19 : vector<2x6x256xf32>
    %22 = math.tanh %21 : vector<2x6x256xf32>
    %cst_14 = arith.constant 5.000000e-01 : f32
    %23 = vector.broadcast %cst_14 : f32 to vector<2x6x256xf32>
    %24 = arith.mulf %23, %22 : vector<2x6x256xf32>
    %cst_15 = arith.constant 5.000000e-01 : f32
    %25 = vector.broadcast %cst_15 : f32 to vector<2x6x256xf32>
    %26 = arith.addf %24, %25 : vector<2x6x256xf32>
    %c0_16 = arith.constant 0 : index
    %c0_17 = arith.constant 0 : index
    %c0_18 = arith.constant 0 : index
    %27 = vector.load %arg4[%c0_16, %c0_17, %c0_18] : memref<2x6x256xf32, #tpu.memory_space<vmem>>, vector<2x6x256xf32>
    tpu.vector_store %arg4[%c0_16, %c0_17, %c0_18], %26 {strides = array<i32>} : memref<2x6x256xf32, #tpu.memory_space<vmem>>, vector<2x6x256xf32>,
    return
  }
  func.func @transform_0(%arg0: i32) -> (i32, i32, i32) {
    %c0_i32 = arith.constant 0 : i32
    %c0_i32_0 = arith.constant 0 : i32
    %c0_i32_1 = arith.constant 0 : i32
    return %arg0, %c0_i32, %c0_i32_0 : i32, i32, i32
  }
  func.func @transform_1(%arg0: i32) -> (i32, i32) {
    %c0_i32 = arith.constant 0 : i32
    %c0_i32_0 = arith.constant 0 : i32
    %c0_i32_1 = arith.constant 0 : i32
    return %c0_i32, %c0_i32_0 : i32, i32
  }
  func.func @transform_2(%arg0: i32) -> (i32, i32) {
    %c0_i32 = arith.constant 0 : i32
    %c0_i32_0 = arith.constant 0 : i32
    %c0_i32_1 = arith.constant 0 : i32
    return %c0_i32, %c0_i32_0 : i32, i32
  }
  func.func @transform_3(%arg0: i32) -> (i32, i32, i32) {
    %c0_i32 = arith.constant 0 : i32
    %c0_i32_0 = arith.constant 0 : i32
    %c0_i32_1 = arith.constant 0 : i32
    return %arg0, %c0_i32, %c0_i32_0 : i32, i32, i32
  }
}

</mosaic_0001>

<bundles_post_ra>
// kernel: tpu_custom_call.1
= control target key start
LH: loop header
LB: loop body
LE: loop exit
PB: predicated region body
PF: predicated region fallthrough
CT: control target
= control target key end

     0   :  { %vm18_vm0 = vcmask 1045504   ;;  %v34_v12 = vlaneseq  ;;  %vm38_vm1 = vcmask 1041409   ;;  %vm40_vm2 = vcmask 48128   ;;  %s208_s0 = inlined_call_operand.vmem [shape: f32[2,6,256], index: 0, kind: input, shape index: {}]   ;;  %s209_s1 = inlined_call_operand.vmem [shape: f32[6,2], index: 1, kind: input, shape index: {}]   ;;  %s210_s2 = inlined_call_operand.vmem [shape: f32[2,6], index: 2, kind: input, shape index: {}]   ;;  %s211_s3 = inlined_call_operand.vmem [shape: f32[2,6,256], index: 3, kind: output, shape index: {}]  }
   0x1   :  { %v14_v0 = vld [vmem:[%s208_s0] sm:$0x3f]  ;;  %v15_v1 = vld [vmem:[%s208_s0 + $0x8] sm:$0x3f]  ;;  %v16_v5 = vld [vmem:[%s208_s0 + $0x10] sm:$0x3f] }
   0x2   :  { %v19_v2 = vsel %vm18_vm0, %v14_v0, 0.0  ;;  %v20_v3 = vsel %vm18_vm0, %v15_v1, 0.0  ;;  %v17_v6 = vld [vmem:[%s208_s0 + $0x18] sm:$0x3f]  ;;  %v24_v7 = vsel %vm18_vm0, %v16_v5, 0.0  ;;  %v35_v13 = vand.u32 127, %v34_v12 }
   0x3   :  { %v21_v4 = vadd.f32 %v20_v3, %v19_v2  ;;  %v25_v8 = vsel %vm18_vm0, %v17_v6, 0.0  ;;  %v31_v10 = vld [vmem:[%s209_s1] sm:$0x3f]  ;;  %vm72_vm3 = vcmask 1041408   ;;  %vm68_vm4 = vcmask 15360  }
   0x4   :  { %v26_v9 = vadd.f32 %v25_v8, %v24_v7  ;;  %142 = vmatpush.msk.msra.mxu0 %vm18_vm0, %v31_v10  ;;  %v67_v20 = vld [vmem:[%s210_s2] sm:$0x3]  ;;  %v102_v23 = vshrl.u32 %v34_v12, 7 }
   0x5   :  { %22 = vadd.xlane.f32.xlu0 %v21_v4  ;;  %144 = vmatpush.msk.msra.mxu1 %vm72_vm3, %v67_v20 }
   0x6   :  { %146 = vset.pattern.permute.xlu1 %v102_v23  ;;  %147 = vset.pattern.permute.xlu0 %v102_v23 }
   0xd   :  { %27 = vadd.xlane.f32.xlu0 %v26_v9 }
  0x78   :  { %v23_v11 = vpop.xlane.xlu0 %22 }
  0x79   :  { %v29_v14 = vmul.f32 0.00390625, %v23_v11 }
  0x7b   :  { %v36_v17 = vperm.slane %v29_v14, %v35_v13 }
  0x80   :  { %v28_v15 = vpop.xlane.xlu0 %27 }
  0x81   :  { %v30_v16 = vmul.f32 0.00390625, %v28_v15 }
  0x83   :  { %v37_v18 = vperm.slane %v30_v16, %v35_v13 }
  0x85   :  { %v39_v19 = vsel %vm38_vm1, %v37_v18, %v36_v17 }
  0x86   :  { %143 = vmatmul.msk.f32.vlgmr.msra.gmra.mxu0 %vm40_vm2, %v39_v19 }
 0x103   :  { %v63_v21 = vpop.f32.mrf.mxu0 }
 0x104   :  { %v66_v22 = vmax.f32 %v63_v21, 0.0 }
 0x106   :  { %145 = vmatmul.msk.f32.vlgmr.msra.gmra.mxu1 %vm68_vm4, %v66_v22 }
 0x183   :  { %v93_v24 = vpop.f32.mrf.mxu1 }
 0x184   :  { %v96_v25 = vmul.f32 0.5, %v93_v24 }
 0x186   :  { %148 = vtanh.f32 %v96_v25 }
 0x18c   :  { %v149_v26 = vpop.eup %148 }
 0x18d   :  { %v98_v27 = vmul.f32 0.5, %v149_v26 }
 0x18f   :  { %v99_v28 = vadd.f32 0.5, %v98_v27 }
 0x191   :  { %v100_v29 = vperm.slane %v99_v28, 0  ;;  %v107_v30 = vperm.slane %v99_v28, 1 }
 0x193   :  { %105 = vperm.xlu1 %146, %v100_v29  }
 0x19b   :  { %112 = vperm.xlu1 %146, %v107_v30  }
 0x205   :  { %v106_v31 = vpop.permute.xlu1 %105 }
 0x206   :  { %v114_v32 = vmul.f32 %v106_v31, %v14_v0  ;;  %v115_v33 = vmul.f32 %v106_v31, %v15_v1 }
 0x208   :  { %v118_v34 = vmul.f32 0.5, %v114_v32  ;;  %v119_v35 = vmul.f32 0.5, %v115_v33 }
 0x20a   :  { %150 = vtanh.f32 %v118_v34 }
 0x20b   :  { %152 = vtanh.f32 %v119_v35 }
 0x20d   :  { %v113_v36 = vpop.permute.xlu1 %112 }
 0x20e   :  { %v116_v37 = vmul.f32 %v113_v36, %v16_v5  ;;  %v117_v38 = vmul.f32 %v113_v36, %v17_v6 }
 0x210   :  { %v151_v39 = vpop.eup %150  ;;  %v120_v40 = vmul.f32 0.5, %v116_v37  ;;  %v121_v41 = vmul.f32 0.5, %v117_v38 }
 0x211   :  { %v153_v42 = vpop.eup %152  ;;  %v126_v43 = vmul.f32 0.5, %v151_v39 }
 0x212   :  { %v127_v44 = vmul.f32 0.5, %v153_v42  ;;  %154 = vtanh.f32 %v120_v40 }
 0x213   :  { %v130_v45 = vadd.f32 0.5, %v126_v43  ;;  %156 = vtanh.f32 %v121_v41 }
 0x214   :  { %v131_v46 = vadd.f32 0.5, %v127_v44 }
 0x215   :  { %134 = vst [vmem:[%s211_s3] sm:$0x3f] %v130_v45 }
 0x216   :  { %135 = vst [vmem:[%s211_s3 + $0x8] sm:$0x3f] %v131_v46 }
 0x218   :  { %v155_v47 = vpop.eup %154 }
 0x219   :  { %v157_v48 = vpop.eup %156  ;;  %v128_v49 = vmul.f32 0.5, %v155_v47 }
 0x21a   :  { %v129_v50 = vmul.f32 0.5, %v157_v48 }
 0x21b   :  { %v132_v51 = vadd.f32 0.5, %v128_v49 }
 0x21c   :  { %v133_v52 = vadd.f32 0.5, %v129_v50 }
 0x21d   :  { %136 = vst [vmem:[%s211_s3 + $0x10] sm:$0x3f] %v132_v51 }
 0x21e   :  { %137 = vst [vmem:[%s211_s3 + $0x18] sm:$0x3f] %v133_v52 }

</bundles_post_ra>
